<compile_context>
chip_gen: v6e
topology: v6e:2x2x1
jax: 0.10.0
libtpu: 0.0.40
codegen_flags: <defaults>
</compile_context>

<pallas_src>
import functools

import jax
import jax.numpy as jnp
from jax.experimental import pallas as pl
from jax.experimental.pallas import tpu as pltpu


def _fmix32(h):
    """murmur3 32-bit finalizer: fixed shifts/multiplies -> portable VPU ops."""
    h = h ^ (h >> 16)
    h = h * jnp.uint32(0x85EBCA6B)
    h = h ^ (h >> 13)
    h = h * jnp.uint32(0xC2B2AE35)
    h = h ^ (h >> 16)
    return h


def _gumbel_softmax_kernel(seed_ref, x_ref, o_ref, *, tau, noise, hard, eps,
                           row_tile):
    """One (row_tile, D) tile: gumbel noise + softmax (+ straight-through one-hot)."""
    x = x_ref[...].astype(jnp.float32)
    D = x.shape[-1]

    if noise != 0.0:
        # Stateless counter-based RNG: hash(global element id, seed) -> u32 bits.
        row0 = pl.program_id(0) * row_tile
        r = jax.lax.broadcasted_iota(jnp.int32, x.shape, 0) + row0
        c = jax.lax.broadcasted_iota(jnp.int32, x.shape, 1)
        gid = (r * D + c).astype(jnp.uint32)
        seed_u = seed_ref[0].astype(jnp.uint32)
        bits = _fmix32(gid ^ (seed_u * jnp.uint32(0x9E3779B9)))
        # top 24 bits -> exact float32 uniform in [0, 1)
        u = (bits >> 8).astype(jnp.int32).astype(jnp.float32) * (1.0 / (1 << 24))
        # gumbel_noise(): -log(-log(rand + eps) + eps)
        z = -jnp.log(-jnp.log(u + eps) + eps)
        x = x + noise * z

    if tau != 1.0:
        x = x * (1.0 / tau)  # constant multiply; avoids per-element divide

    # numerically stable softmax along the last (lane) axis
    m = jnp.max(x, axis=-1, keepdims=True)
    e = jnp.exp(x - m)
    s = jnp.sum(e, axis=-1, keepdims=True)
    probs = e * (1.0 / s)  # per-row reciprocal + 4-wide VPU multiply

    if hard:
        # softmax is monotone -> argmax(probs) == argmax(x); reuse m (no extra
        # XLU max reduction over probs).
        col = jax.lax.broadcasted_iota(jnp.int32, x.shape, 1)
        is_max = x == m
        # first (lowest-index) maximum, matching torch.max / argmax-first ties
        first_idx = jnp.min(jnp.where(is_max, col, D), axis=-1, keepdims=True)
        onehot = (col == first_idx).astype(probs.dtype)
        # straight-through forward value: (onehot - probs).detach() + probs
        probs = (onehot - probs) + probs

    o_ref[...] = probs.astype(o_ref.dtype)


def _auto_row_tile(R, D, target_bytes=2 << 20, max_rows=2048):
    """~1-4 MiB f32 block, multiple of 8 rows, capped at the (8-rounded) row count."""
    rows = max(8, min(max_rows, target_bytes // max(1, D * 4)))
    rows = max(8, (rows // 8) * 8)
    r_pad = ((R + 7) // 8) * 8
    return int(min(rows, r_pad))


def gumbel_softmax(logits, seed=0, *, dim=-1, tau=1.0, noise=1.0, hard=True,
                   eps=1e-9, row_tile=None):
    """JAX/Pallas equivalent of the reference gumbel_softmax forward pass."""
    moved = dim != -1 and dim != logits.ndim - 1
    if moved:
        logits = jnp.moveaxis(logits, dim, -1)

    orig_shape = logits.shape
    D = orig_shape[-1]
    x2 = logits.reshape(-1, D)
    R = x2.shape[0]

    if row_tile is None:
        row_tile = _auto_row_tile(R, D)
    row_tile = int(row_tile)

    seed_arr = jnp.asarray([seed], dtype=jnp.int32)

    kernel = functools.partial(
        _gumbel_softmax_kernel,
        tau=float(tau), noise=float(noise), hard=bool(hard), eps=float(eps),
        row_tile=row_tile)

    out = pl.pallas_call(
        kernel,
        out_shape=jax.ShapeDtypeStruct((R, D), logits.dtype),
        grid_spec=pltpu.PrefetchScalarGridSpec(
            num_scalar_prefetch=1,                 # seed lands in SMEM
            grid=(pl.cdiv(R, row_tile),),          # ragged last block; no HBM pad pass
            in_specs=[pl.BlockSpec((row_tile, D), lambda i, seed: (i, 0))],
            out_specs=pl.BlockSpec((row_tile, D), lambda i, seed: (i, 0)),
        ),
        compiler_params=pltpu.CompilerParams(
            dimension_semantics=("parallel",)),    # independent tiles -> megacore
    )(seed_arr, x2)

    out = out.reshape(orig_shape)
    if moved:
        out = jnp.moveaxis(out, -1, dim)
    return out


class GumbelSoftmax:
    """Mirrors the nn.Module: stores opts; eval mode forces noise=0, hard=True."""

    def __init__(self, **kwargs):
        self.opts = kwargs
        self.training = True

    def __call__(self, logits, seed=0, **kwargs):
        opts = dict(self.opts)
        if not self.training:
            opts['noise'] = 0.0
            opts['hard'] = True
        opts.update(kwargs)
        return gumbel_softmax(logits, seed=seed, **opts)


if __name__ == "__main__":
    key = jax.random.PRNGKey(0)
    B, S, D = 2, 8, 32  # (batch, seq, codebook_size), softmax over dim=-1
    logits = jax.random.normal(key, (B, S, D), dtype=jnp.float32)

    mod = GumbelSoftmax(dim=-1, tau=1.0, noise=1.0, hard=True)

    # --- training mode: gumbel noise + hard straight-through one-hot ---
    mod.training = True
    out_train = jax.block_until_ready(mod(logits, seed=42))
    assert out_train.shape == logits.shape and out_train.dtype == logits.dtype
    row_sums = jnp.sum(out_train, axis=-1)
    row_maxs = jnp.max(out_train, axis=-1)
    assert jnp.allclose(row_sums, 1.0, atol=1e-4), "hard output rows must sum to 1"
    assert jnp.allclose(row_maxs, 1.0, atol=1e-4), "hard output must be one-hot"

    # --- eval mode: no noise, check exactly against a pure-JAX reference ---
    mod.training = False
    out_eval = jax.block_until_ready(mod(logits))
    ref_probs = jax.nn.softmax(logits, axis=-1)
    ref_onehot = jax.nn.one_hot(jnp.argmax(ref_probs, axis=-1), D,
                                dtype=logits.dtype)
    ref = (ref_onehot - ref_probs) + ref_probs  # straight-through forward value
    assert jnp.allclose(out_eval, ref, atol=1e-5), "eval-mode mismatch vs reference"

    print("KERNEL_OK")
</pallas_src>

<mosaic_0001>
module attributes {stable_mosaic.version = 11 : i64} {
  func.func @_gumbel_softmax_kernel(%arg0: i32, %arg1: memref<1xi32, #tpu.memory_space<smem>>, %arg2: memref<16x32xf32, #tpu.memory_space<vmem>>, %arg3: memref<16x32xf32, #tpu.memory_space<vmem>>) attributes {dimension_semantics = [#tpu.dimension_semantics<parallel>], iteration_bounds = array<i64: 1>, scalar_prefetch = 1 : i64, scratch_operands = 0 : i64, tpu.core_type = #tpu.core_type<tc>, window_params = [{transform_indices = @transform_0, window_bounds = array<i64: 16, 32>}, {transform_indices = @transform_1, window_bounds = array<i64: 16, 32>}]} {
    %c0 = arith.constant 0 : index
    %c0_0 = arith.constant 0 : index
    %0 = vector.load %arg2[%c0, %c0_0] : memref<16x32xf32, #tpu.memory_space<vmem>>, vector<16x32xf32>
    %c16_i32 = arith.constant 16 : i32
    %1 = arith.muli %arg0, %c16_i32 : i32
    %2 = tpu.iota {dimensions = array<i32: 0>} : vector<16x32xi32>
    %3 = vector.broadcast %1 : i32 to vector<16x32xi32>
    %4 = arith.addi %2, %3 : vector<16x32xi32>
    %5 = tpu.iota {dimensions = array<i32: 1>} : vector<16x32xi32>
    %c32_i32 = arith.constant 32 : i32
    %6 = vector.broadcast %c32_i32 : i32 to vector<16x32xi32>
    %7 = arith.muli %4, %6 : vector<16x32xi32>
    %8 = arith.addi %7, %5 : vector<16x32xi32>
    %c0_1 = arith.constant 0 : index
    %9 = memref.load %arg1[%c0_1] : memref<1xi32, #tpu.memory_space<smem>>
    %c-1640531527_i32 = arith.constant -1640531527 : i32
    %10 = arith.muli %9, %c-1640531527_i32 : i32
    %11 = vector.broadcast %10 : i32 to vector<16x32xi32>
    %12 = arith.xori %8, %11 : vector<16x32xi32>
    %c16_i32_2 = arith.constant 16 : i32
    %13 = vector.broadcast %c16_i32_2 : i32 to vector<16x32xi32>
    %14 = arith.shrui %12, %13 : vector<16x32xi32>
    %15 = arith.xori %12, %14 : vector<16x32xi32>
    %c-2048144789_i32 = arith.constant -2048144789 : i32
    %16 = vector.broadcast %c-2048144789_i32 : i32 to vector<16x32xi32>
    %17 = arith.muli %15, %16 : vector<16x32xi32>
    %c13_i32 = arith.constant 13 : i32
    %18 = vector.broadcast %c13_i32 : i32 to vector<16x32xi32>
    %19 = arith.shrui %17, %18 : vector<16x32xi32>
    %20 = arith.xori %17, %19 : vector<16x32xi32>
    %c-1028477387_i32 = arith.constant -1028477387 : i32
    %21 = vector.broadcast %c-1028477387_i32 : i32 to vector<16x32xi32>
    %22 = arith.muli %20, %21 : vector<16x32xi32>
    %c16_i32_3 = arith.constant 16 : i32
    %23 = vector.broadcast %c16_i32_3 : i32 to vector<16x32xi32>
    %24 = arith.shrui %22, %23 : vector<16x32xi32>
    %25 = arith.xori %22, %24 : vector<16x32xi32>
    %c8_i32 = arith.constant 8 : i32
    %26 = vector.broadcast %c8_i32 : i32 to vector<16x32xi32>
    %27 = arith.shrui %25, %26 : vector<16x32xi32>
    %28 = arith.sitofp %27 : vector<16x32xi32> to vector<16x32xf32>
    %cst = arith.constant 5.96046448E-8 : f32
    %29 = vector.broadcast %cst : f32 to vector<16x32xf32>
    %30 = arith.mulf %28, %29 : vector<16x32xf32>
    %cst_4 = arith.constant 9.99999971E-10 : f32
    %31 = vector.broadcast %cst_4 : f32 to vector<16x32xf32>
    %32 = arith.addf %30, %31 : vector<16x32xf32>
    %33 = math.log %32 : vector<16x32xf32>
    %cst_5 = arith.constant 0.000000e+00 : f32
    %34 = vector.broadcast %cst_5 : f32 to vector<16x32xf32>
    %35 = arith.subf %34, %33 : vector<16x32xf32>
    %cst_6 = arith.constant 9.99999971E-10 : f32
    %36 = vector.broadcast %cst_6 : f32 to vector<16x32xf32>
    %37 = arith.addf %35, %36 : vector<16x32xf32>
    %38 = math.log %37 : vector<16x32xf32>
    %cst_7 = arith.constant 0.000000e+00 : f32
    %39 = vector.broadcast %cst_7 : f32 to vector<16x32xf32>
    %40 = arith.subf %39, %38 : vector<16x32xf32>
    %cst_8 = arith.constant 1.000000e+00 : f32
    %41 = vector.broadcast %cst_8 : f32 to vector<16x32xf32>
    %42 = arith.mulf %41, %40 : vector<16x32xf32>
    %43 = arith.addf %0, %42 : vector<16x32xf32>
    %cst_9 = arith.constant dense<0xFF800000> : vector<16xf32>
    %44 = vector.multi_reduction <maximumf>, %43, %cst_9 [1] : vector<16x32xf32> to vector<16xf32>
    %45 = vector.shape_cast %44 : vector<16xf32> to vector<16x1xf32>
    %46 = vector.broadcast %45 : vector<16x1xf32> to vector<16x32xf32>
    %47 = arith.subf %43, %46 : vector<16x32xf32>
    %48 = math.exp %47 : vector<16x32xf32>
    %cst_10 = arith.constant dense<0.000000e+00> : vector<16xf32>
    %49 = vector.multi_reduction <add>, %48, %cst_10 [1] : vector<16x32xf32> to vector<16xf32>
    %50 = vector.shape_cast %49 : vector<16xf32> to vector<16x1xf32>
    %cst_11 = arith.constant 1.000000e+00 : f32
    %51 = vector.broadcast %cst_11 : f32 to vector<16x1xf32>
    %52 = arith.divf %51, %50 : vector<16x1xf32>
    %53 = vector.broadcast %52 : vector<16x1xf32> to vector<16x32xf32>
    %54 = arith.mulf %48, %53 : vector<16x32xf32>
    %55 = tpu.iota {dimensions = array<i32: 1>} : vector<16x32xi32>
    %56 = vector.broadcast %45 : vector<16x1xf32> to vector<16x32xf32>
    %57 = arith.cmpf oeq, %43, %56 : vector<16x32xf32>
    %c32_i32_12 = arith.constant 32 : i32
    %58 = vector.broadcast %c32_i32_12 : i32 to vector<16x32xi32>
    %59 = arith.select %57, %55, %58 : vector<16x32xi1>, vector<16x32xi32>
    %cst_13 = arith.constant dense<2147483647> : vector<16xi32>
    %60 = vector.multi_reduction <minsi>, %59, %cst_13 [1] : vector<16x32xi32> to vector<16xi32>
    %61 = vector.shape_cast %60 : vector<16xi32> to vector<16x1xi32>
    %62 = vector.broadcast %61 : vector<16x1xi32> to vector<16x32xi32>
    %63 = arith.cmpi eq, %55, %62 : vector<16x32xi32>
    %64 = arith.extui %63 : vector<16x32xi1> to vector<16x32xi32>
    %65 = arith.sitofp %64 : vector<16x32xi32> to vector<16x32xf32>
    %66 = arith.subf %65, %54 : vector<16x32xf32>
    %67 = arith.addf %66, %54 : vector<16x32xf32>
    %c0_14 = arith.constant 0 : index
    %c0_15 = arith.constant 0 : index
    %68 = vector.load %arg3[%c0_14, %c0_15] : memref<16x32xf32, #tpu.memory_space<vmem>>, vector<16x32xf32>
    tpu.vector_store %arg3[%c0_14, %c0_15], %67 {strides = array<i32>} : memref<16x32xf32, #tpu.memory_space<vmem>>, vector<16x32xf32>,
    return
  }
  func.func @transform_0(%arg0: i32, %arg1: memref<1xi32, #tpu.memory_space<smem>>) -> (i32, i32) {
    %c0_i32 = arith.constant 0 : i32
    %c0_i32_0 = arith.constant 0 : i32
    return %arg0, %c0_i32 : i32, i32
  }
  func.func @transform_1(%arg0: i32, %arg1: memref<1xi32, #tpu.memory_space<smem>>) -> (i32, i32) {
    %c0_i32 = arith.constant 0 : i32
    %c0_i32_0 = arith.constant 0 : i32
    return %arg0, %c0_i32 : i32, i32
  }
}

</mosaic_0001>

<bundles_post_ra>
// kernel: tpu_custom_call.1
= control target key start
LH: loop header
LB: loop body
LE: loop exit
PB: predicated region body
PF: predicated region fallthrough
CT: control target
= control target key end

     0   :  { %8 = vsyncpa [#allocation5], 0  ;;  %s291_s0 = inlined_call_operand.<no memory space> [shape: s32[1], index: 0, kind: input, shape index: {}]   ;;  %s292_s1 = inlined_call_operand.hbm [shape: f32[16,32], index: 1, kind: input, shape index: {}]   ;;  %s293_s2 = inlined_call_operand.hbm [shape: f32[16,32], index: 2, kind: output, shape index: {}]  }
   0x1   :  { %9 = vsyncpa [#allocation6], 0  ;;  %s240_s9 = smov [#allocation4]  }
   0x2   :  { %s15_s10 = sshll.u32 %s240_s9, 4  ;;  %s16_s10 = int_to_ptr.vmem [resolvable:$true] %s15_s10 }
   0x3   :  { %s204_s11 = scalar_lea.vmem %s16_s10, 256  ;;  %p209_p1 = scmp.lt.s32.totalorder %s16_s10, %s16_s10 }
   0x4   :  { %p205_p0 = scmp.ne.s32.totalorder %s16_s10, %s204_s11  ;;  %p210_p2 = scmp.lt.s32.totalorder %s204_s11, %s204_s11 }
   0x6   :  { %p211_p3 = por %p210_p2, %p209_p1 }
   0x8   :  { %p212_p4 = pnand %p211_p3, %p205_p0 }
   0xa   :  { %215 = shalt.err (!%p212_p4)
}
   0xb   :  { %s241_s12 = smov 128   ;;  %s242_s13 = smov 8  }
   0xc   :  { %21 = dma.hbm_to_vmem [thread:$0]  %s292_s1, 256, %s16_s10, [#allocation5], %s241_s12, %s241_s12, %s242_s13  }
   0xd   :  { %236 = dma.done.wait [#allocation5], 256  }
   0xe   :  { %237 = vsyncadd [#allocation5], 4294967040  ;;  %v28_v0 = vlaneseq  ;;  %s41_s18 = smul.u32 2654435769, %s291_s0  ;;  %v25_v46 = vld [vmem:[#allocation4] sm:$0xff]  ;;  %vm85_vm0 = vcmask 261120  }
   0xf   :  { %v26_v49 = vld [vmem:[#allocation4 + $0x8] sm:$0xff]  ;;  %s244_s0 = smov [#allocation7]  }
  0x10   :  { %v29_v1 = vshrl.u32 %v28_v0, 7  ;;  %v269_v2 = vand.u32 127, %v28_v0  ;;  %v42_v5 = vstv %s41_s18  ;;  %s161_s1 = sshll.u32 %s244_s0, 4  ;;  %s162_s1 = int_to_ptr.vmem [resolvable:$true] %s161_s1 }
  0x11   :  { %s216_s19 = scalar_lea.vmem %s162_s1, 256  ;;  %p221_p6 = scmp.lt.s32.totalorder %s162_s1, %s162_s1 }
  0x12   :  { %v36_v3 = vmul.u32 32, %v29_v1  ;;  %v30_v4 = vadd.s32 8, %v29_v1  ;;  %p217_p5 = scmp.ne.s32.totalorder %s162_s1, %s216_s19  ;;  %p222_p7 = scmp.lt.s32.totalorder %s216_s19, %s216_s19 }
  0x14   :  { %v38_v6 = vadd.s32 %v36_v3, %v269_v2  ;;  %v37_v7 = vmul.u32 32, %v30_v4  ;;  %p223_p8 = por %p222_p7, %p221_p6 }
  0x16   :  { %v43_v8 = vxor.u32 %v42_v5, %v38_v6  ;;  %v39_v9 = vadd.s32 %v37_v7, %v269_v2  ;;  %p224_p9 = pnand %p223_p8, %p217_p5 }
  0x18   :  { %v45_v10 = vshrl.u32 %v43_v8, 16  ;;  %v44_v11 = vxor.u32 %v42_v5, %v39_v9 }
  0x1a   :  { %v47_v12 = vxor.u32 %v45_v10, %v43_v8  ;;  %v46_v13 = vshrl.u32 %v44_v11, 16 }
  0x1c   :  { %v49_v14 = vmul.u32 2246822507, %v47_v12  ;;  %v48_v15 = vxor.u32 %v46_v13, %v44_v11 }
  0x1e   :  { %v51_v16 = vshrl.u32 %v49_v14, 13  ;;  %v50_v17 = vmul.u32 2246822507, %v48_v15 }
  0x20   :  { %v53_v18 = vxor.u32 %v51_v16, %v49_v14  ;;  %v52_v19 = vshrl.u32 %v50_v17, 13 }
  0x22   :  { %v55_v20 = vmul.u32 3266489909, %v53_v18  ;;  %v54_v21 = vxor.u32 %v52_v19, %v50_v17 }
  0x24   :  { %v57_v22 = vshrl.u32 %v55_v20, 16  ;;  %v56_v23 = vmul.u32 3266489909, %v54_v21 }
  0x26   :  { %v59_v24 = vxor.u32 %v57_v22, %v55_v20  ;;  %v58_v25 = vshrl.u32 %v56_v23, 16 }
  0x28   :  { %v61_v26 = vshrl.u32 %v59_v24, 8  ;;  %v60_v27 = vxor.u32 %v58_v25, %v56_v23 }
  0x2a   :  { %v63_v28 = vcvt.s32.f32 %v61_v26  ;;  %v62_v29 = vshrl.u32 %v60_v27, 8 }
  0x2c   :  { %v65_v30 = vmul.f32 5.9604645e-08, %v63_v28  ;;  %v64_v31 = vcvt.s32.f32 %v62_v29 }
  0x2e   :  { %v67_v32 = vadd.f32 1e-09, %v65_v30  ;;  %v66_v33 = vmul.f32 5.9604645e-08, %v64_v31 }
  0x30   :  { %180 = vlog2.f32 %v67_v32  ;;  %v68_v34 = vadd.f32 1e-09, %v66_v33  ;;  %v243_v32 = vmov 0.0  }
  0x32   :  { %182 = vlog2.f32 %v68_v34 }
  0x3d   :  { %v181_v35 = vpop.eup %180 }
  0x3e   :  { %v70_v36 = vmul.f32 0.6931472, %v181_v35 }
  0x3f   :  { %v183_v37 = vpop.eup %182 }
  0x40   :  { %v73_v38 = vsub.f32 0.0, %v70_v36  ;;  %v72_v39 = vmul.f32 0.6931472, %v183_v37 }
  0x42   :  { %v75_v40 = vadd.f32 1e-09, %v73_v38  ;;  %v74_v41 = vsub.f32 0.0, %v72_v39 }
  0x44   :  { %184 = vlog2.f32 %v75_v40  ;;  %v76_v42 = vadd.f32 1e-09, %v74_v41 }
  0x46   :  { %186 = vlog2.f32 %v76_v42 }
  0x51   :  { %v185_v43 = vpop.eup %184 }
  0x52   :  { %v78_v44 = vmul.f32 0.6931472, %v185_v43 }
  0x53   :  { %v187_v45 = vpop.eup %186 }
  0x54   :  { %v81_v47 = vsub.f32 0.0, %v78_v44  ;;  %v80_v48 = vmul.f32 0.6931472, %v187_v45 }
  0x56   :  { %v83_v50 = vadd.f32 %v81_v47, %v25_v46  ;;  %v82_v51 = vsub.f32 0.0, %v80_v48 }
  0x58   :  { %v86_v52 = vsel %vm85_vm0, %v83_v50, -inf  ;;  %v84_v53 = vadd.f32 %v82_v51, %v26_v49 }
  0x59   :  { %87 = vmax.xlane.f32.xlu0 %v86_v52 }
  0x5a   :  { %v89_v54 = vsel %vm85_vm0, %v84_v53, -inf }
  0x5d   :  { %90 = vmax.xlane.f32.xlu0 %v89_v54 }
  0xe2   :  { %v88_v55 = vpop.xlane.xlu0 %87 }
  0xe3   :  { %v92_v56 = vsub.f32 %v83_v50, %v88_v55  ;;  %vm110_vm1 = vcmp.eq.f32.partialorder %v83_v50, %v88_v55 }
  0xe4   :  { %v112_v57 = vsel %vm110_vm1, %v269_v2, 32 }
  0xe5   :  { %v94_v58 = vmul.f32 1.442695, %v92_v56  ;;  %v114_v59 = vsel %vm85_vm0, %v112_v57, 2147483647 }
  0xe6   :  { %v91_v60 = vpop.xlane.xlu0 %90  ;;  %v116_v61 = vshra.s32 %v114_v59, 16  ;;  %v115_v10 = vand.u32 65535, %v114_v59 }
  0xe7   :  { %188 = vpow2.f32 %v94_v58  ;;  %v93_v62 = vsub.f32 %v84_v53, %v91_v60  ;;  %vm111_vm2 = vcmp.eq.f32.partialorder %v84_v53, %v91_v60 }
  0xe8   :  { %v113_v63 = vsel %vm111_vm2, %v269_v2, 32  ;;  %v118_v0 = vcvt.s32.f32 %v116_v61  ;;  %v117_v12 = vcvt.s32.f32 %v115_v10 }
  0xe9   :  { %v96_v1 = vmul.f32 1.442695, %v93_v62  ;;  %v129_v3 = vsel %vm85_vm0, %v113_v63, 2147483647 }
  0xea   :  { %119 = vmin.xlane.f32.xlu1 %v118_v0  ;;  %v131_v4 = vshra.s32 %v129_v3, 16  ;;  %v130_v13 = vand.u32 65535, %v129_v3 }
  0xeb   :  { %190 = vpow2.f32 %v96_v1 }
  0xec   :  { %v133_v5 = vcvt.s32.f32 %v131_v4  ;;  %v132_v16 = vcvt.s32.f32 %v130_v13 }
  0xee   :  { %134 = vmin.xlane.f32.xlu1 %v133_v5 }
  0xf4   :  { %v189_v6 = vpop.eup %188 }
  0xf5   :  { %v98_v7 = vsel %vm85_vm0, %v189_v6, 0.0 }
  0xf6   :  { %99 = vadd.xlane.f32.xlu0 %v98_v7 }
  0xf8   :  { %v191_v8 = vpop.eup %190 }
  0xf9   :  { %v101_v9 = vsel %vm85_vm0, %v191_v8, 0.0 }
  0xfa   :  { %102 = vadd.xlane.f32.xlu1 %v101_v9 }
 0x173   :  { %v120_v11 = vpop.xlane.xlu1 %119 }
 0x174   :  { %vm121_vm3 = vcmp.eq.f32.partialorder %v118_v0, %v120_v11  ;;  %v126_v20 = vcvt.f32.s32 %v120_v11 }
 0x175   :  { %v122_v14 = vsel %vm121_vm3, %v117_v12, inf }
 0x176   :  { %123 = vmin.xlane.f32.xlu0 %v122_v14  ;;  %v127_v22 = vshll.u32 %v126_v20, 16 }
 0x177   :  { %v135_v15 = vpop.xlane.xlu1 %134 }
 0x178   :  { %vm136_vm4 = vcmp.eq.f32.partialorder %v133_v5, %v135_v15  ;;  %v141_v23 = vcvt.f32.s32 %v135_v15 }
 0x179   :  { %v137_v17 = vsel %vm136_vm4, %v132_v16, inf }
 0x17a   :  { %138 = vmin.xlane.f32.xlu1 %v137_v17  ;;  %v142_v28 = vshll.u32 %v141_v23, 16 }
 0x17f   :  { %v100_v18 = vpop.xlane.xlu0 %99 }
 0x180   :  { %192 = vrcp.f32 %v100_v18 }
 0x183   :  { %v103_v19 = vpop.xlane.xlu1 %102 }
 0x184   :  { %194 = vrcp.f32 %v103_v19 }
 0x18d   :  { %v193_v25 = vpop.eup %192 }
 0x18e   :  { %v108_v29 = vmul.f32 %v193_v25, %v189_v6 }
 0x191   :  { %v195_v31 = vpop.eup %194 }
 0x192   :  { %v109_v37 = vmul.f32 %v195_v31, %v191_v8 }
 0x1ff   :  { %v124_v21 = vpop.xlane.xlu0 %123 }
 0x200   :  { %v125_v24 = vcvt.f32.s32 %v124_v21 }
 0x202   :  { %v128_v26 = vadd.s32 %v127_v22, %v125_v24 }
 0x203   :  { %v139_v27 = vpop.xlane.xlu1 %138 }
 0x204   :  { %vm144_vm5 = vcmp.eq.s32.totalorder %v269_v2, %v128_v26  ;;  %v140_v30 = vcvt.f32.s32 %v139_v27 }
 0x205   :  { %v173_v33 = vsel %vm144_vm5, 1.0, %v243_v32 }
 0x206   :  { %v150_v34 = vsub.f32 %v173_v33, %v108_v29  ;;  %v143_v35 = vadd.s32 %v142_v28, %v140_v30 }
 0x208   :  { %v152_v36 = vadd.f32 %v150_v34, %v108_v29  ;;  %vm145_vm6 = vcmp.eq.s32.totalorder %v269_v2, %v143_v35 }
 0x209   :  { %v174_v38 = vsel %vm145_vm6, 1.0, %v243_v32 }
 0x20a   :  { %154 = vst.msk [vmem:[#allocation7] sm:$0xff] %vm85_vm0, %v152_v36  ;;  %v151_v39 = vsub.f32 %v174_v38, %v109_v37 }
 0x20c   :  { %v153_v40 = vadd.f32 %v151_v39, %v109_v37 }
 0x20e   :  { %155 = vst.msk [vmem:[#allocation7 + $0x8] sm:$0xff] %vm85_vm0, %v153_v40 }
 0x20f   :  { %227 = shalt.err (!%p224_p9)
}
 0x210   :  { %167 = dma.vmem_to_hbm [thread:$0]  %s162_s1, 256, %s293_s2, [#allocation6], %s241_s12, %s241_s12, %s242_s13  }
 0x211   :  { %238 = dma.done.wait [#allocation6], 256  }
 0x212   :  { %239 = vsyncadd [#allocation6], 4294967040 }
 0x213   :  { %171 = vsyncpa [#allocation5], 1 }
 0x214   :  { %172 = vsyncpa [#allocation6], 1 }

</bundles_post_ra>
